<compile_context>
chip_gen: v5e
topology: v5e:2x2
jax: 0.10.0
libtpu: 0.0.40
codegen_flags: <defaults>
</compile_context>

<pallas_src>
import functools

import jax
import jax.numpy as jnp
from jax.experimental import pallas as pl
from jax.experimental.pallas import tpu as pltpu


def _attlayer2_kernel(*refs, has_mask):
    if has_mask:
        x_ref, m_ref, w_ref, b_ref, q_ref, o_ref = refs
    else:
        x_ref, w_ref, b_ref, q_ref, o_ref = refs
        m_ref = None

    tb, s, d = x_ref.shape
    x = x_ref[...]                                            # (TB, S, D) f32

    # One big MXU matmul for the whole slab: (TB*S, D) @ (D, D).
    h = jnp.tanh(
        jnp.dot(x.reshape(tb * s, d), w_ref[...],
                preferred_element_type=jnp.float32)
        + b_ref[...]
    )                                                         # (TB*S, D)

    # Attention scores: VPU multiply + lane (XLU) reduce instead of an N=1
    # MXU matmul (h @ q), which would waste a systolic pass for 1 lane.
    att = jnp.sum(h.reshape(tb, s, d) * q_ref[...].reshape(1, 1, d),
                  axis=-1)                                    # (TB, S)

    e = jnp.exp(att)
    if has_mask:
        e = e * m_ref[...]                                    # (TB, S) lane-dense
    denom = jnp.sum(e, axis=-1, keepdims=True) + 1e-8         # (TB, 1)
    wgt = e * pl.reciprocal(denom)                            # EUP, exact

    out = jnp.sum(x * wgt[:, :, None], axis=1)                # (TB, D)
    o_ref[...] = out.astype(o_ref.dtype)


def _choose_block_batch(batch, seq, dim):
    """Batch rows per grid step.

    Targets ~1024 MXU rows (TB*S) per step while keeping the x block at
    <= ~4 MiB so the double-buffered working set stays well inside the
    default scoped-VMEM limit on every chip (v5e 16 MiB .. v7x 32 MiB).
    Keeps TB a multiple of 8 (sublane-aligned output stores) and prefers a
    TB that divides B exactly (no HBM pad copy of x in the wrapper), unless
    one block covers the whole batch.
    """
    row_bytes = seq * dim * 4
    target = max(1, 1024 // max(seq, 1))                     # ~1024 MXU rows
    vmem_cap = max(1, (4 * 1024 * 1024) // max(row_bytes, 1))  # x block <= 4 MiB
    tb = min(target, vmem_cap)
    if tb >= batch:
        return batch
    tb = max(8, (tb // 8) * 8)
    if tb >= batch:
        return batch
    # Prefer a tile that exactly divides the batch: avoids padding x in HBM.
    for cand in range(tb, 7, -8):
        if batch % cand == 0:
            return cand
    return tb


def attlayer2_forward(inputs, W, b, q, mask=None, block_batch=None):
    """AttLayer2 forward.

    inputs: (B, S, D); W: (D, D); b: (D,); q: (D, 1) or (D,);
    mask: (B, S) or None.  Returns (B, D).
    """
    B, S, D = inputs.shape
    out_dtype = inputs.dtype

    x = inputs.astype(jnp.float32)
    W32 = W.astype(jnp.float32).reshape(D, D)
    b2 = b.astype(jnp.float32).reshape(1, D)
    q2 = q.astype(jnp.float32).reshape(1, D)

    tb = _choose_block_batch(B, S, D) if block_batch is None else block_batch
    n_blocks = pl.cdiv(B, tb)
    Bp = n_blocks * tb
    if Bp != B:
        x = jnp.pad(x, ((0, Bp - B), (0, 0), (0, 0)))

    has_mask = mask is not None
    operands = [x]
    in_specs = [pl.BlockSpec((tb, S, D), lambda i: (i, 0, 0))]
    if has_mask:
        # Lane-dense mask: S on the lane axis, no trailing dim of 1.
        m = mask.astype(jnp.float32).reshape(B, S)
        if Bp != B:
            m = jnp.pad(m, ((0, Bp - B), (0, 0)))
        operands.append(m)
        in_specs.append(pl.BlockSpec((tb, S), lambda i: (i, 0)))
    operands += [W32, b2, q2]
    in_specs += [
        pl.BlockSpec((D, D), lambda i: (0, 0)),
        pl.BlockSpec((1, D), lambda i: (0, 0)),
        pl.BlockSpec((1, D), lambda i: (0, 0)),
    ]

    cost = pl.CostEstimate(
        flops=2 * Bp * S * D * D + 4 * Bp * S * D,
        transcendentals=Bp * S * (D + 1),
        bytes_accessed=(Bp * S * D + D * D + Bp * D
                        + (Bp * S if has_mask else 0)) * 4,
    )

    out = pl.pallas_call(
        functools.partial(_attlayer2_kernel, has_mask=has_mask),
        out_shape=jax.ShapeDtypeStruct((Bp, D), out_dtype),
        grid_spec=pltpu.PrefetchScalarGridSpec(
            num_scalar_prefetch=0,
            grid=(n_blocks,),
            in_specs=in_specs,
            out_specs=pl.BlockSpec((tb, D), lambda i: (i, 0)),
        ),
        compiler_params=pltpu.CompilerParams(
            # parallel batch axis -> megacore split on v7x, neutral elsewhere.
            dimension_semantics=("parallel",),
        ),
        cost_estimate=cost,
    )(*operands)

    return out[:B]


def _reference(inputs, W, b, q, mask=None):
    h = jnp.tanh(jnp.matmul(inputs, W) + b)               # (B, S, D)
    att = jnp.sum(h * q.reshape(1, 1, -1), axis=-1)       # (B, S)  == (h @ q).squeeze
    e = jnp.exp(att)
    if mask is not None:
        e = e * mask.astype(jnp.float32)
    aw = e / (jnp.sum(e, axis=-1, keepdims=True) + 1e-8)
    return jnp.sum(inputs * aw[..., None], axis=1)        # (B, D)


if __name__ == "__main__":
    B, S, D = 2, 8, 32

    key = jax.random.PRNGKey(0)
    kx, kw, kq, km = jax.random.split(key, 4)

    # Deterministic xavier-uniform-style init (shapes from AttLayer2.__init__).
    w_limit = (6.0 / (D + D)) ** 0.5
    q_limit = (6.0 / (D + 1)) ** 0.5
    W = jax.random.uniform(kw, (D, D), jnp.float32, -w_limit, w_limit)
    q = jax.random.uniform(kq, (D, 1), jnp.float32, -q_limit, q_limit)
    b = jnp.zeros((D,), dtype=jnp.float32)
    x = jax.random.normal(kx, (B, S, D), dtype=jnp.float32)

    # mask=None path (default PyTorch forward): no mask tensor is built or DMA'd.
    out = jax.block_until_ready(attlayer2_forward(x, W, b, q, mask=None))
    ref = _reference(x, W, b, q, mask=None)
    assert out.shape == (B, D)
    assert jnp.allclose(out, ref, atol=1e-4, rtol=1e-4), "mismatch (mask=None)"

    # masked path (lane-dense (B, S) mask).
    mask = (jax.random.uniform(km, (B, S)) > 0.3).astype(jnp.float32)
    out_m = jax.block_until_ready(attlayer2_forward(x, W, b, q, mask=mask))
    ref_m = _reference(x, W, b, q, mask=mask)
    assert jnp.allclose(out_m, ref_m, atol=1e-4, rtol=1e-4), "mismatch (masked)"

    print("KERNEL_OK")
</pallas_src>

<mosaic_0001>
module attributes {stable_mosaic.version = 11 : i64} {
  func.func @_attlayer2_kernel(%arg0: i32, %arg1: memref<2x8x32xf32, #tpu.memory_space<vmem>>, %arg2: memref<32x32xf32, #tpu.memory_space<vmem>>, %arg3: memref<1x32xf32, #tpu.memory_space<vmem>>, %arg4: memref<1x32xf32, #tpu.memory_space<vmem>>, %arg5: memref<2x32xf32, #tpu.memory_space<vmem>>) attributes {dimension_semantics = [#tpu.dimension_semantics<parallel>], iteration_bounds = array<i64: 1>, scalar_prefetch = 0 : i64, scratch_operands = 0 : i64, tpu.core_type = #tpu.core_type<tc>, window_params = [{transform_indices = @transform_0, window_bounds = array<i64: 2, 8, 32>}, {pipeline_mode = #tpu.pipeline_mode<synchronous>, transform_indices = @transform_1, window_bounds = array<i64: 32, 32>}, {pipeline_mode = #tpu.pipeline_mode<synchronous>, transform_indices = @transform_2, window_bounds = array<i64: 1, 32>}, {pipeline_mode = #tpu.pipeline_mode<synchronous>, transform_indices = @transform_3, window_bounds = array<i64: 1, 32>}, {transform_indices = @transform_4, window_bounds = array<i64: 2, 32>}]} {
    %c0 = arith.constant 0 : index
    %c0_0 = arith.constant 0 : index
    %c0_1 = arith.constant 0 : index
    %0 = vector.load %arg1[%c0, %c0_0, %c0_1] : memref<2x8x32xf32, #tpu.memory_space<vmem>>, vector<2x8x32xf32>
    %1 = vector.shape_cast %0 : vector<2x8x32xf32> to vector<16x32xf32>
    %c0_2 = arith.constant 0 : index
    %c0_3 = arith.constant 0 : index
    %2 = vector.load %arg2[%c0_2, %c0_3] : memref<32x32xf32, #tpu.memory_space<vmem>>, vector<32x32xf32>
    %cst = arith.constant dense<0.000000e+00> : vector<16x32xf32>
    %3 = tpu.matmul %1, %2, %cst {dimension_numbers = #tpu.dot_dimension_numbers<[1], [0], [0], [1], [0, 0, 1, 1], [], []>} : vector<16x32xf32>, vector<32x32xf32>, vector<16x32xf32> -> vector<16x32xf32>
    %c0_4 = arith.constant 0 : index
    %c0_5 = arith.constant 0 : index
    %4 = vector.load %arg3[%c0_4, %c0_5] : memref<1x32xf32, #tpu.memory_space<vmem>>, vector<1x32xf32>
    %5 = vector.broadcast %4 : vector<1x32xf32> to vector<16x32xf32>
    %6 = arith.addf %3, %5 : vector<16x32xf32>
    %7 = math.tanh %6 : vector<16x32xf32>
    %8 = vector.shape_cast %7 : vector<16x32xf32> to vector<2x8x32xf32>
    %c0_6 = arith.constant 0 : index
    %c0_7 = arith.constant 0 : index
    %9 = vector.load %arg4[%c0_6, %c0_7] : memref<1x32xf32, #tpu.memory_space<vmem>>, vector<1x32xf32>
    %10 = vector.shape_cast %9 : vector<1x32xf32> to vector<1x1x32xf32>
    %11 = vector.broadcast %10 : vector<1x1x32xf32> to vector<2x8x32xf32>
    %12 = arith.mulf %8, %11 : vector<2x8x32xf32>
    %cst_8 = arith.constant dense<0.000000e+00> : vector<2x8xf32>
    %13 = vector.multi_reduction <add>, %12, %cst_8 [2] : vector<2x8x32xf32> to vector<2x8xf32>
    %14 = math.exp %13 : vector<2x8xf32>
    %cst_9 = arith.constant dense<0.000000e+00> : vector<2xf32>
    %15 = vector.multi_reduction <add>, %14, %cst_9 [1] : vector<2x8xf32> to vector<2xf32>
    %16 = vector.shape_cast %15 : vector<2xf32> to vector<2x1xf32>
    %cst_10 = arith.constant 9.99999993E-9 : f32
    %17 = vector.broadcast %cst_10 : f32 to vector<2x1xf32>
    %18 = arith.addf %16, %17 : vector<2x1xf32>
    %19 = tpu.reciprocal %18 : vector<2x1xf32> -> vector<2x1xf32>
    %20 = vector.broadcast %19 : vector<2x1xf32> to vector<2x8xf32>
    %21 = arith.mulf %14, %20 : vector<2x8xf32>
    %22 = vector.shape_cast %21 : vector<2x8xf32> to vector<2x8x1xf32>
    %23 = vector.broadcast %22 : vector<2x8x1xf32> to vector<2x8x32xf32>
    %24 = arith.mulf %0, %23 : vector<2x8x32xf32>
    %cst_11 = arith.constant dense<0.000000e+00> : vector<2x32xf32>
    %25 = vector.multi_reduction <add>, %24, %cst_11 [1] : vector<2x8x32xf32> to vector<2x32xf32>
    %c0_12 = arith.constant 0 : index
    %c0_13 = arith.constant 0 : index
    %26 = vector.load %arg5[%c0_12, %c0_13] : memref<2x32xf32, #tpu.memory_space<vmem>>, vector<2x32xf32>
    tpu.vector_store %arg5[%c0_12, %c0_13], %25 {strides = array<i32>} : memref<2x32xf32, #tpu.memory_space<vmem>>, vector<2x32xf32>,
    return
  }
  func.func @transform_0(%arg0: i32) -> (i32, i32, i32) {
    %c0_i32 = arith.constant 0 : i32
    %c0_i32_0 = arith.constant 0 : i32
    %c0_i32_1 = arith.constant 0 : i32
    return %arg0, %c0_i32, %c0_i32_0 : i32, i32, i32
  }
  func.func @transform_1(%arg0: i32) -> (i32, i32) {
    %c0_i32 = arith.constant 0 : i32
    %c0_i32_0 = arith.constant 0 : i32
    %c0_i32_1 = arith.constant 0 : i32
    return %c0_i32, %c0_i32_0 : i32, i32
  }
  func.func @transform_2(%arg0: i32) -> (i32, i32) {
    %c0_i32 = arith.constant 0 : i32
    %c0_i32_0 = arith.constant 0 : i32
    %c0_i32_1 = arith.constant 0 : i32
    return %c0_i32, %c0_i32_0 : i32, i32
  }
  func.func @transform_3(%arg0: i32) -> (i32, i32) {
    %c0_i32 = arith.constant 0 : i32
    %c0_i32_0 = arith.constant 0 : i32
    %c0_i32_1 = arith.constant 0 : i32
    return %c0_i32, %c0_i32_0 : i32, i32
  }
  func.func @transform_4(%arg0: i32) -> (i32, i32) {
    %c0_i32 = arith.constant 0 : i32
    %c0_i32_0 = arith.constant 0 : i32
    return %arg0, %c0_i32 : i32, i32
  }
}

</mosaic_0001>

<bundles_post_ra>
// kernel: tpu_custom_call.1
= control target key start
LH: loop header
LB: loop body
LE: loop exit
PB: predicated region body
PF: predicated region fallthrough
CT: control target
= control target key end

     0   :  { %9 = vsyncpa [#allocation3], 0  ;;  %s360_s0 = inlined_call_operand.hbm [shape: f32[2,8,32], index: 0, kind: input, shape index: {}]   ;;  %s361_s1 = inlined_call_operand.hbm [shape: f32[32,32], index: 1, kind: input, shape index: {}]   ;;  %s362_s2 = inlined_call_operand.vmem [shape: f32[1,32], index: 2, kind: input, shape index: {}]   ;;  %s363_s3 = inlined_call_operand.vmem [shape: f32[1,32], index: 3, kind: input, shape index: {}]   ;;  %s364_s4 = inlined_call_operand.hbm [shape: f32[2,32], index: 4, kind: output, shape index: {}]  }
   0x1   :  { %10 = vsyncpa [#allocation6], 0 }
   0x2   :  { %11 = vsyncpa [#allocation4], 0  ;;  %s16_s17 = sshll.u32 %s360_s0, 4  ;;  %s298_s18 = smov [#allocation2]   ;;  %s17_s17 = int_to_ptr.hbm [resolvable:$true] %s16_s17 }
   0x3   :  { %s18_s19 = sshll.u32 %s298_s18, 4  ;;  %s29_s22 = sshll.u32 %s361_s1, 4  ;;  %s19_s19 = int_to_ptr.vmem [resolvable:$true] %s18_s19  ;;  %s30_s22 = int_to_ptr.hbm [resolvable:$true] %s29_s22 }
   0x4   :  { %s299_s23 = smov 128   ;;  %s300_s24 = smov 8  }
   0x5   :  { %24 = dma.hbm_to_vmem [thread:$0]  %s17_s17, 256, %s19_s19, [#allocation3], %s299_s23, %s299_s23, %s300_s24  }
   0x6   :  { %s301_s25 = smov [#allocation5]  }
   0x7   :  { %s31_s26 = sshll.u32 %s301_s25, 4  ;;  %s32_s26 = int_to_ptr.vmem [resolvable:$true] %s31_s26 }
   0x8   :  { %37 = dma.hbm_to_vmem [thread:$0]  %s30_s22, 512, %s32_s26, [#allocation6], %s299_s23, %s299_s23, %s300_s24  }
   0x9   :  { %292 = dma.done.wait [#allocation3], 256  }
   0xa   :  { %293 = vsyncadd [#allocation3], 4294967040 }
   0xb   :  { %294 = dma.done.wait [#allocation6], 512  }
   0xc   :  { %295 = vsyncadd [#allocation6], 4294966784  ;;  %v55_v0 = vld [vmem:[#allocation5 + $0x18] sm:$0xff]  ;;  %v54_v1 = vld [vmem:[#allocation5 + $0x10] sm:$0xff]  ;;  %vm60_vm0 = vcmask 261120   ;;  %v110_v22 = vlaneseq  ;;  %vm114_vm1 = vcmask 1041409  }
   0xd   :  { %79 = vmatpush.msra.mxu0 %v55_v0  ;;  %195 = vmatpush.msra.mxu1 %v55_v0  ;;  %v53_v2 = vld [vmem:[#allocation5 + $0x8] sm:$0xff]  ;;  %v52_v3 = vld [vmem:[#allocation5] sm:$0xff]  ;;  %v335_v4 = vld [vmem:[#allocation2] sm:$0xff]  ;;  %vm117_vm2 = vcmask 58368   ;;  %v302_v30 = vmov 0   ;;  %s182_s5 = sshll.u32 %s364_s4, 4  ;;  %s183_s5 = int_to_ptr.hbm [resolvable:$true] %s182_s5 }
   0xe   :  { %v337_v5 = vld [vmem:[#allocation2 + $0x8] sm:$0xff]  ;;  %v208_v6 = vld [vmem:[%s362_s2] ss:$0 sm:$0xff]  ;;  %v111_v23 = vand.u32 127, %v110_v22  ;;  %206 = vset.pattern.permute.xlu2 %v302_v30  ;;  %205 = vset.pattern.permute.xlu1 %v302_v30  ;;  %s303_s2 = smov [#allocation7]   ;;  %vm173_vm7 = vcmask 254976  }
   0xf   :  { %80 = vmatpush.msra.mxu0 %v54_v1  ;;  %196 = vmatpush.msra.mxu1 %v54_v1  ;;  %v209_v11 = vld [vmem:[%s363_s3] ss:$0 sm:$0xff]  ;;  %s180_s3 = sshll.u32 %s303_s2, 4  ;;  %s181_s3 = int_to_ptr.vmem [resolvable:$true] %s180_s3 }
  0x10   :  { %207 = vset.pattern.permute.xlu0 %v302_v30 }
  0x11   :  { %81 = vmatpush.msra.mxu0 %v53_v2  ;;  %197 = vmatpush.msra.mxu1 %v53_v2 }
  0x13   :  { %82 = vmatpush.msra.mxu0 %v52_v3  ;;  %198 = vmatpush.msra.mxu1 %v52_v3 }
  0x14   :  { %193 = vmatmul.msk.f32.vlgmr.msra.gmra.mxu0 %vm60_vm0, %v335_v4  ;;  %194 = vmatmul.msk.f32.vlgmr.msra.gmra.mxu1 %vm60_vm0, %v337_v5 }
  0x91   :  { %v84_v7 = vpop.f32.mrf.mxu0  ;;  %v87_v8 = vpop.f32.mrf.mxu1 }
  0x92   :  { %v85_v9 = vadd.f32 %v208_v6, %v84_v7  ;;  %v88_v10 = vadd.f32 %v208_v6, %v87_v8 }
  0x94   :  { %210 = vtanh.f32 %v85_v9 }
  0x95   :  { %212 = vtanh.f32 %v88_v10 }
  0x9a   :  { %v211_v12 = vpop.eup %210 }
  0x9b   :  { %v96_v13 = vmul.f32 %v211_v12, %v209_v11  ;;  %v213_v14 = vpop.eup %212 }
  0x9c   :  { %v97_v16 = vmul.f32 %v213_v14, %v209_v11 }
  0x9d   :  { %v98_v15 = vsel %vm60_vm0, %v96_v13, 0.0 }
  0x9e   :  { %99 = vadd.xlane.f32.xlu0 %v98_v15  ;;  %v101_v17 = vsel %vm60_vm0, %v97_v16, 0.0 }
  0xa6   :  { %102 = vadd.xlane.f32.xlu0 %v101_v17 }
 0x111   :  { %v100_v18 = vpop.xlane.xlu0 %99 }
 0x112   :  { %v104_v19 = vmul.f32 1.442695, %v100_v18 }
 0x114   :  { %214 = vpow2.f32 %v104_v19 }
 0x119   :  { %v103_v20 = vpop.xlane.xlu0 %102 }
 0x11a   :  { %v106_v21 = vmul.f32 1.442695, %v103_v20  ;;  %v215_v24 = vpop.eup %214 }
 0x11b   :  { %v112_v26 = vperm.slane %v215_v24, %v111_v23 }
 0x11c   :  { %216 = vpow2.f32 %v106_v21 }
 0x122   :  { %v217_v25 = vpop.eup %216 }
 0x123   :  { %v113_v27 = vperm.slane %v217_v25, %v111_v23 }
 0x125   :  { %v115_v28 = vsel %vm114_vm1, %v113_v27, %v112_v26 }
 0x126   :  { %v118_v29 = vsel %vm117_vm2, %v115_v28, 0.0 }
 0x127   :  { %119 = vadd.xlane.f32.xlu1 %v118_v29 }
 0x19a   :  { %v120_v31 = vpop.xlane.xlu1 %119 }
 0x19b   :  { %v121_v32 = vadd.f32 1e-08, %v120_v31 }
 0x19d   :  { %218 = vrcp.f32 %v121_v32  ;;  %v133_v36 = vand.u32 2147483648, %v121_v32  ;;  %v131_v38 = vand.u32 2147483647, %v121_v32  ;;  %vm127_vm4 = vweird.f32 %v121_v32 }
 0x19f   :  { %v134_v40 = vor.u32 1.1754944e-38, %v133_v36  ;;  %vm132_vm6 = vcmp.eq.f32.partialorder %v131_v38, 8.507059e+37 }
 0x1a3   :  { %v219_v33 = vpop.eup %218 }
 0x1a4   :  { %v123_v34 = vmul.f32 %v219_v33, %v121_v32  ;;  %vm128_vm3 = vweird.f32 %v219_v33 }
 0x1a5   :  { %vm129_vm5 = vmor %vm127_vm4, %vm128_vm3 }
 0x1a6   :  { %v124_v35 = vsub.f32 1.0, %v123_v34 }
 0x1a8   :  { %v125_v37 = vmul.f32 %v219_v33, %v124_v35 }
 0x1aa   :  { %v126_v39 = vadd.f32 %v219_v33, %v125_v37 }
 0x1ac   :  { %v130_v41 = vsel %vm129_vm5, %v219_v33, %v126_v39 }
 0x1ad   :  { %v135_v42 = vsel %vm132_vm6, %v134_v40, %v130_v41 }
 0x1ae   :  { %v138_v43 = vperm.slane %v135_v42, 1  ;;  %v137_v44 = vperm.slane %v135_v42, 0 }
 0x1b0   :  { %v142_v45 = vmul.f32 %v217_v25, %v138_v43  ;;  %v141_v46 = vmul.f32 %v215_v24, %v137_v44 }
 0x1b2   :  { %150 = vperm.xlu2 %206, %v142_v45   ;;  %145 = vperm.xlu1 %205, %v141_v46  }
 0x20c   :  { %v151_v47 = vpop.permute.xlu2 %150 }
 0x20d   :  { %v154_v48 = vmul.f32 %v151_v47, %v337_v5 }
 0x20f   :  { %v162_v49 = vsel %vm60_vm0, %v154_v48, 0.0 }
 0x210   :  { %v163_v50 = vrot.slane %v162_v49, 4 }
 0x212   :  { %v164_v51 = vadd.f32 %v163_v50, %v162_v49 }
 0x214   :  { %v165_v54 = vrot.slane %v164_v51, 2 }
 0x216   :  { %v166_v57 = vadd.f32 %v165_v54, %v164_v51 }
 0x218   :  { %v167_v60 = vrot.slane %v166_v57, 1 }
 0x21a   :  { %v168_v63 = vadd.f32 %v167_v60, %v166_v57 }
 0x224   :  { %v146_v52 = vpop.permute.xlu1 %145 }
 0x225   :  { %v153_v53 = vmul.f32 %v146_v52, %v335_v4 }
 0x227   :  { %v155_v55 = vsel %vm60_vm0, %v153_v53, 0.0 }
 0x228   :  { %v156_v56 = vrot.slane %v155_v55, 4 }
 0x22a   :  { %v157_v58 = vadd.f32 %v156_v56, %v155_v55 }
 0x22c   :  { %v158_v59 = vrot.slane %v157_v58, 2 }
 0x22e   :  { %v159_v61 = vadd.f32 %v158_v59, %v157_v58 }
 0x230   :  { %v160_v62 = vrot.slane %v159_v61, 1 }
 0x232   :  { %v161_v0 = vadd.f32 %v160_v62, %v159_v61 }
 0x234   :  { %v171_v1 = vsel %vm114_vm1, %v168_v63, %v161_v0 }
 0x235   :  { %174 = vst.msk [vmem:[#allocation7] sm:$0x3] %vm173_vm7, %v171_v1 }
 0x236   :  { %185 = dma.vmem_to_hbm [thread:$0]  %s181_s3, 32, %s183_s5, [#allocation4]  }
 0x237   :  { %296 = dma.done.wait [#allocation4], 32  }
 0x238   :  { %297 = vsyncadd [#allocation4], 4294967264 }
 0x239   :  { %190 = vsyncpa [#allocation3], 1 }
 0x23a   :  { %191 = vsyncpa [#allocation6], 1 }
 0x23b   :  { %192 = vsyncpa [#allocation4], 1 }

</bundles_post_ra>
